<compile_context>
chip_gen: v7x
topology: tpu7x:2x2x1
jax: 0.10.0
libtpu: 0.0.40
codegen_flags: <defaults>
</compile_context>

<pallas_src>
import functools

import jax
import jax.numpy as jnp
from jax.experimental import pallas as pl
from jax.experimental.pallas import tpu as pltpu


ACT_DTYPE = jnp.bfloat16  # HBM dtype for activations and conv weights


# ----------------------------------------------------------------------------
# Kernel A: generic fused conv (stride 1, dilation `dil`) + folded-BN affine
#           (+ residual add) (+ ReLU).  Supports several input channel slabs
#           (used to avoid materializing the 320-channel concat).
# ----------------------------------------------------------------------------
def _make_conv_kernel(ksize, dil, relu, has_res, n_slabs):
    def kernel(*refs):
        x_refs = refs[:n_slabs]
        w_refs = refs[n_slabs:2 * n_slabs]
        s_ref, b_ref = refs[2 * n_slabs], refs[2 * n_slabs + 1]
        pos = 2 * n_slabs + 2
        r_ref = refs[pos] if has_res else None
        o_ref = refs[pos + 1] if has_res else refs[pos]
        acc_ref = refs[-1]                      # f32 VMEM accumulator scratch
        _, Ho, Wo, Cout = o_ref.shape

        acc_ref[...] = jnp.zeros(acc_ref.shape, acc_ref.dtype)
        for s in range(n_slabs):
            x_ref, w_ref = x_refs[s], w_refs[s]
            Cin = x_ref.shape[3]
            for i in range(ksize):
                for j in range(ksize):
                    patch = x_ref[0, pl.ds(i * dil, Ho), pl.ds(j * dil, Wo), :]
                    patch = patch.reshape(Ho * Wo, Cin)          # bf16 operand
                    acc_ref[...] += jnp.dot(
                        patch, w_ref[i * ksize + j],
                        preferred_element_type=jnp.float32)

        out = acc_ref[...] * s_ref[...] + b_ref[...]             # f32 BN affine
        if has_res:
            out = out + r_ref[...].reshape(Ho * Wo, Cout).astype(jnp.float32)
        if relu:
            out = jnp.maximum(out, 0.0)
        o_ref[...] = out.reshape(1, Ho, Wo, Cout).astype(o_ref.dtype)

    return kernel


@functools.lru_cache(maxsize=None)
def _conv_call(N, Hp, Wp, cins, Cout, ksize, dil, relu, has_res):
    Ho = Hp - (ksize - 1) * dil
    Wo = Wp - (ksize - 1) * dil
    n_slabs = len(cins)
    kernel = _make_conv_kernel(ksize, dil, relu, has_res, n_slabs)

    in_specs = []
    for c in cins:
        in_specs.append(pl.BlockSpec((1, Hp, Wp, c), lambda n: (n, 0, 0, 0)))
    for c in cins:
        in_specs.append(
            pl.BlockSpec((ksize * ksize, c, Cout), lambda n: (0, 0, 0)))
    in_specs += [pl.BlockSpec((1, Cout), lambda n: (0, 0)),
                 pl.BlockSpec((1, Cout), lambda n: (0, 0))]
    if has_res:
        in_specs.append(pl.BlockSpec((1, Ho, Wo, Cout), lambda n: (n, 0, 0, 0)))

    return pl.pallas_call(
        kernel,
        grid=(N,),
        in_specs=in_specs,
        out_specs=pl.BlockSpec((1, Ho, Wo, Cout), lambda n: (n, 0, 0, 0)),
        out_shape=jax.ShapeDtypeStruct((N, Ho, Wo, Cout), ACT_DTYPE),
        scratch_shapes=[pltpu.VMEM((Ho * Wo, Cout), jnp.float32)],
        compiler_params=pltpu.CompilerParams(
            dimension_semantics=("parallel",)),
    )


def conv_bn_act(xs, ws, scale, bias, *, ksize, dil=1, pad=0, relu=False,
                residual=None):
    """Fused stride-1 conv + folded BN (+residual)(+ReLU).  xs/ws may be lists
    of channel slabs that are summed into one conv output."""
    if not isinstance(xs, (list, tuple)):
        xs, ws = [xs], [ws]
    if pad > 0:
        xs = [jnp.pad(x, ((0, 0), (pad, pad), (pad, pad), (0, 0))) for x in xs]
    N, Hp, Wp = (int(d) for d in xs[0].shape[:3])
    cins = tuple(int(x.shape[3]) for x in xs)
    Cout = int(ws[0].shape[-1])
    call = _conv_call(N, Hp, Wp, cins, Cout, ksize, dil, relu,
                      residual is not None)
    args = tuple(xs) + tuple(ws) + (scale, bias)
    if residual is not None:
        args = args + (residual,)
    return call(*args)


# ----------------------------------------------------------------------------
# Kernel B: fused BasicBlock (stride 1, no downsample):
#   conv1(3x3,BN,ReLU) -> padded VMEM scratch -> conv2(3x3,BN) -> + x
# The conv1 activation never leaves VMEM.
# ----------------------------------------------------------------------------
def _make_block_kernel(dil):
    d = dil

    def kernel(x_ref, w1_ref, s1_ref, b1_ref, w2_ref, s2_ref, b2_ref,
               o_ref, mid_ref, acc_ref):
        _, H, W, C = o_ref.shape

        def conv3x3(read_win, w_ref):
            acc_ref[...] = jnp.zeros(acc_ref.shape, acc_ref.dtype)
            for i in range(3):
                for j in range(3):
                    patch = read_win(i, j).reshape(H * W, C)
                    acc_ref[...] += jnp.dot(
                        patch, w_ref[i * 3 + j],
                        preferred_element_type=jnp.float32)
            return acc_ref[...]

        # conv1 + BN1 + ReLU -> padded bf16 VMEM intermediate
        a1 = conv3x3(
            lambda i, j: x_ref[0, pl.ds(i * d, H), pl.ds(j * d, W), :], w1_ref)
        mid = jnp.maximum(a1 * s1_ref[...] + b1_ref[...], 0.0)
        mid_ref[...] = jnp.zeros(mid_ref.shape, mid_ref.dtype)  # zero pad ring
        mid_ref[pl.ds(d, H), pl.ds(d, W), :] = (
            mid.reshape(H, W, C).astype(mid_ref.dtype))

        # conv2 + BN2 + residual add (no ReLU after the add, per BasicBlock)
        a2 = conv3x3(
            lambda i, j: mid_ref[pl.ds(i * d, H), pl.ds(j * d, W), :], w2_ref)
        res = x_ref[0, pl.ds(d, H), pl.ds(d, W), :].reshape(H * W, C)
        out = a2 * s2_ref[...] + b2_ref[...] + res.astype(jnp.float32)
        o_ref[...] = out.reshape(1, H, W, C).astype(o_ref.dtype)

    return kernel


@functools.lru_cache(maxsize=None)
def _block_call(N, H, W, C, dil):
    Hp, Wp = H + 2 * dil, W + 2 * dil
    kernel = _make_block_kernel(dil)
    x_spec = pl.BlockSpec((1, Hp, Wp, C), lambda n: (n, 0, 0, 0))
    w_spec = pl.BlockSpec((9, C, C), lambda n: (0, 0, 0))
    v_spec = pl.BlockSpec((1, C), lambda n: (0, 0))
    return pl.pallas_call(
        kernel,
        grid=(N,),
        in_specs=[x_spec, w_spec, v_spec, v_spec, w_spec, v_spec, v_spec],
        out_specs=pl.BlockSpec((1, H, W, C), lambda n: (n, 0, 0, 0)),
        out_shape=jax.ShapeDtypeStruct((N, H, W, C), ACT_DTYPE),
        scratch_shapes=[pltpu.VMEM((Hp, Wp, C), ACT_DTYPE),
                        pltpu.VMEM((H * W, C), jnp.float32)],
        compiler_params=pltpu.CompilerParams(
            dimension_semantics=("parallel",)),
    )


def fused_basic_block(x, bp, dil):
    N, H, W, C = (int(d) for d in x.shape)
    xp = jnp.pad(x, ((0, 0), (dil, dil), (dil, dil), (0, 0)))
    w1, s1, b1 = bp['conv1']
    w2, s2, b2 = bp['conv2']
    return _block_call(N, H, W, C, dil)(xp, w1, s1, b1, w2, s2, b2)


# ----------------------------------------------------------------------------
# Stride-2 handling: space-to-depth(2) in the wrapper turns a stride-2 3x3
# conv into a stride-1 2x2 conv (exact, no wasted FLOPs / HBM writes).
# ----------------------------------------------------------------------------
def _space_to_depth2(x, pad):
    N, H, W, C = x.shape
    eh = (H + 2 * pad) % 2
    ew = (W + 2 * pad) % 2
    x = jnp.pad(x, ((0, 0), (pad, pad + eh), (pad, pad + ew), (0, 0)))
    Hp, Wp = x.shape[1], x.shape[2]
    x = x.reshape(N, Hp // 2, 2, Wp // 2, 2, C)
    x = jnp.transpose(x, (0, 1, 3, 2, 4, 5))
    return x.reshape(N, Hp // 2, Wp // 2, 4 * C)


def _s2d_weight(w):
    """(3,3,Cin,Cout) stride-2 conv -> equivalent 2x2 stride-1 conv weights
    over the space-to-depth(2) input, stored as (4, 4*Cin, Cout)."""
    _, _, cin, cout = w.shape
    wn = jnp.zeros((2, 2, 4 * cin, cout), w.dtype)
    for i in range(3):
        for j in range(3):
            off = (i % 2) * 2 * cin + (j % 2) * cin
            wn = wn.at[i // 2, j // 2, off:off + cin, :].set(w[i, j])
    return wn.reshape(4, 4 * cin, cout)


# ----------------------------------------------------------------------------
# Parameter construction (deterministic, synthetic; BN folded into scale/bias)
# ----------------------------------------------------------------------------
def _bn_fold(keys, cout):
    gamma = 1.0 + 0.1 * jax.random.normal(keys[0], (cout,), jnp.float32)
    beta = 0.1 * jax.random.normal(keys[1], (cout,), jnp.float32)
    mean = 0.1 * jax.random.normal(keys[2], (cout,), jnp.float32)
    var = 1.0 + 0.1 * jax.random.uniform(keys[3], (cout,), jnp.float32)
    scale = gamma * jax.lax.rsqrt(var + 1e-5)
    bias = beta - mean * scale
    return scale.reshape(1, cout), bias.reshape(1, cout)


def _convbn_params(key, cin, cout, k, *, plain=False, s2d=False):
    kk = jax.random.split(key, 5)
    w = jax.random.normal(kk[0], (k, k, cin, cout), jnp.float32) / float(
        (k * k * cin) ** 0.5)
    if plain:  # bare conv (no BatchNorm), e.g. the last 1x1 of lastconv
        scale = jnp.ones((1, cout), jnp.float32)
        bias = jnp.zeros((1, cout), jnp.float32)
    else:
        scale, bias = _bn_fold(kk[1:], cout)
    wt = _s2d_weight(w) if s2d else w.reshape(k * k, cin, cout)
    return (wt.astype(ACT_DTYPE), scale, bias)


def _convbn_split_params(key, cin_list, cout, k):
    kk = jax.random.split(key, 5)
    cin = sum(cin_list)
    w = jax.random.normal(kk[0], (k, k, cin, cout), jnp.float32) / float(
        (k * k * cin) ** 0.5)
    scale, bias = _bn_fold(kk[1:], cout)
    slabs, off = [], 0
    for c in cin_list:
        slabs.append(
            w[:, :, off:off + c, :].reshape(k * k, c, cout).astype(ACT_DTYPE))
        off += c
    return (slabs, scale, bias)


def _make_layer_params(keys, inplanes, planes, blocks, stride):
    layer = []
    down = None
    if stride != 1 or inplanes != planes:
        down = _convbn_params(next(keys), inplanes, planes, 1)
    layer.append({'conv1': _convbn_params(next(keys), inplanes, planes, 3,
                                          s2d=(stride == 2)),
                  'conv2': _convbn_params(next(keys), planes, planes, 3),
                  'down': down, 'stride': stride})
    for _ in range(1, blocks):
        layer.append({'conv1': _convbn_params(next(keys), planes, planes, 3),
                      'conv2': _convbn_params(next(keys), planes, planes, 3),
                      'down': None, 'stride': 1})
    return layer, planes


def init_feature_extraction_params(key, in_channels):
    keys = iter(jax.random.split(key, 64))
    p = {}
    p['firstconv'] = [
        _convbn_params(next(keys), in_channels, 32, 3, s2d=True),   # stride 2
        _convbn_params(next(keys), 32, 32, 3),
        _convbn_params(next(keys), 32, 32, 3),
    ]
    inplanes = 32
    p['layer1'], inplanes = _make_layer_params(keys, inplanes, 32, 3, 1)
    p['layer2'], inplanes = _make_layer_params(keys, inplanes, 64, 16, 2)
    p['layer3'], inplanes = _make_layer_params(keys, inplanes, 128, 3, 1)
    p['layer4'], inplanes = _make_layer_params(keys, inplanes, 128, 3, 1)
    p['lastconv'] = [
        _convbn_split_params(next(keys), (64, 128, 128), 128, 3),
        _convbn_params(next(keys), 128, 32, 1, plain=True),
    ]
    return p


# ----------------------------------------------------------------------------
# Forward pass (NHWC internally, NCHW at the module boundary)
# ----------------------------------------------------------------------------
def _unfused_block(x, bp, dil):
    pad = dil
    stride = bp['stride']
    if stride == 2:
        out = conv_bn_act(_space_to_depth2(x, pad), *bp['conv1'],
                          ksize=2, relu=True)
    else:
        out = conv_bn_act(x, *bp['conv1'], ksize=3, dil=dil, pad=pad, relu=True)
    if bp['down'] is not None:
        xd = x[:, ::stride, ::stride, :] if stride > 1 else x
        sc = conv_bn_act(xd, *bp['down'], ksize=1, relu=False)
    else:
        sc = x
    # conv2 + BN + residual add fused in the kernel (no ReLU after the add)
    return conv_bn_act(out, *bp['conv2'], ksize=3, dil=dil, pad=pad,
                       relu=False, residual=sc)


def _run_layer(x, layer_params, dil):
    for bp in layer_params:
        if bp['stride'] == 1 and bp['down'] is None:
            x = fused_basic_block(x, bp, dil)
        else:
            x = _unfused_block(x, bp, dil)
    return x


def feature_extraction_forward(x_nchw, params):
    x = jnp.transpose(x_nchw, (0, 2, 3, 1)).astype(ACT_DTYPE)   # NCHW -> NHWC
    out = conv_bn_act(_space_to_depth2(x, 1), *params['firstconv'][0],
                      ksize=2, relu=True)                        # 3x3 stride 2
    out = conv_bn_act(out, *params['firstconv'][1], ksize=3, pad=1, relu=True)
    out = conv_bn_act(out, *params['firstconv'][2], ksize=3, pad=1, relu=True)
    l1 = _run_layer(out, params['layer1'], dil=1)
    l2 = _run_layer(l1, params['layer2'], dil=1)
    l3 = _run_layer(l2, params['layer3'], dil=1)
    l4 = _run_layer(l3, params['layer4'], dil=2)
    # lastconv: 3x3 over the (virtual) 320-channel concat as three slabs
    wsl, sc, bi = params['lastconv'][0]
    y = conv_bn_act([l2, l3, l4], wsl, sc, bi, ksize=3, pad=1, relu=True)
    y = conv_bn_act(y, *params['lastconv'][1], ksize=1, relu=False)
    return jnp.transpose(y, (0, 3, 1, 2)).astype(jnp.float32)    # NHWC -> NCHW


if __name__ == "__main__":
    key = jax.random.PRNGKey(0)
    pkey, xkey = jax.random.split(key)
    # feature_extraction(in_channels=3, structure_fc=0, fuse_mode='aggregate',
    #   affinity_settings={'win_w':3,'win_h':3,'dilation':[1,2,4,8]})
    params = init_feature_extraction_params(pkey, in_channels=3)
    x = jax.random.normal(xkey, (2, 3, 16, 16), jnp.float32)     # NCHW
    y = feature_extraction_forward(x, params)
    y = jax.block_until_ready(y)
    assert y.shape == (2, 32, 4, 4), y.shape
    assert bool(jnp.all(jnp.isfinite(y)))
    print("KERNEL_OK")
</pallas_src>

<mosaic_0001>
module attributes {stable_mosaic.version = 11 : i64} {
  func.func @kernel(%arg0: i32, %arg1: memref<1x9x9x12xbf16, #tpu.memory_space<vmem>>, %arg2: memref<4x12x32xbf16, #tpu.memory_space<vmem>>, %arg3: memref<1x32xf32, #tpu.memory_space<vmem>>, %arg4: memref<1x32xf32, #tpu.memory_space<vmem>>, %arg5: memref<1x8x8x32xbf16, #tpu.memory_space<vmem>>, %arg6: memref<64x32xf32, #tpu.memory_space<vmem>>) attributes {dimension_semantics = [#tpu.dimension_semantics<parallel>], iteration_bounds = array<i64: 2>, scalar_prefetch = 0 : i64, scratch_operands = 1 : i64, tpu.core_type = #tpu.core_type<tc>, window_params = [{transform_indices = @transform_0, window_bounds = array<i64: 1, 9, 9, 12>}, {pipeline_mode = #tpu.pipeline_mode<synchronous>, transform_indices = @transform_1, window_bounds = array<i64: 4, 12, 32>}, {pipeline_mode = #tpu.pipeline_mode<synchronous>, transform_indices = @transform_2, window_bounds = array<i64: 1, 32>}, {pipeline_mode = #tpu.pipeline_mode<synchronous>, transform_indices = @transform_3, window_bounds = array<i64: 1, 32>}, {transform_indices = @transform_4, window_bounds = array<i64: 1, 8, 8, 32>}]} {
    %cst = arith.constant 0.000000e+00 : f32
    %0 = vector.broadcast %cst : f32 to vector<64x32xf32>
    %c0 = arith.constant 0 : index
    %c0_0 = arith.constant 0 : index
    %1 = vector.load %arg6[%c0, %c0_0] : memref<64x32xf32, #tpu.memory_space<vmem>>, vector<64x32xf32>
    tpu.vector_store %arg6[%c0, %c0_0], %0 {strides = array<i32>} : memref<64x32xf32, #tpu.memory_space<vmem>>, vector<64x32xf32>,
    %c0_1 = arith.constant 0 : index
    %c0_2 = arith.constant 0 : index
    %c0_3 = arith.constant 0 : index
    %c0_4 = arith.constant 0 : index
    %2 = vector.load %arg1[%c0_1, %c0_2, %c0_3, %c0_4] : memref<1x9x9x12xbf16, #tpu.memory_space<vmem>>, vector<1x8x8x12xbf16>
    %3 = vector.shape_cast %2 : vector<1x8x8x12xbf16> to vector<8x8x12xbf16>
    %4 = vector.shape_cast %3 : vector<8x8x12xbf16> to vector<64x12xbf16>
    %c0_5 = arith.constant 0 : index
    %c0_6 = arith.constant 0 : index
    %5 = vector.load %arg6[%c0_5, %c0_6] : memref<64x32xf32, #tpu.memory_space<vmem>>, vector<64x32xf32>
    %c0_7 = arith.constant 0 : index
    %c0_8 = arith.constant 0 : index
    %c0_9 = arith.constant 0 : index
    %6 = vector.load %arg2[%c0_7, %c0_8, %c0_9] : memref<4x12x32xbf16, #tpu.memory_space<vmem>>, vector<1x12x32xbf16>
    %7 = vector.shape_cast %6 : vector<1x12x32xbf16> to vector<12x32xbf16>
    %cst_10 = arith.constant dense<0.000000e+00> : vector<64x32xf32>
    %8 = tpu.matmul %4, %7, %cst_10 {dimension_numbers = #tpu.dot_dimension_numbers<[1], [0], [0], [1], [0, 0, 1, 1], [], []>} : vector<64x12xbf16>, vector<12x32xbf16>, vector<64x32xf32> -> vector<64x32xf32>
    %9 = arith.addf %5, %8 : vector<64x32xf32>
    %c0_11 = arith.constant 0 : index
    %c0_12 = arith.constant 0 : index
    %10 = vector.load %arg6[%c0_11, %c0_12] : memref<64x32xf32, #tpu.memory_space<vmem>>, vector<64x32xf32>
    tpu.vector_store %arg6[%c0_11, %c0_12], %9 {strides = array<i32>} : memref<64x32xf32, #tpu.memory_space<vmem>>, vector<64x32xf32>,
    %c0_13 = arith.constant 0 : index
    %c0_14 = arith.constant 0 : index
    %c1 = arith.constant 1 : index
    %c0_15 = arith.constant 0 : index
    %11 = vector.load %arg1[%c0_13, %c0_14, %c1, %c0_15] : memref<1x9x9x12xbf16, #tpu.memory_space<vmem>>, vector<1x8x8x12xbf16>
    %12 = vector.shape_cast %11 : vector<1x8x8x12xbf16> to vector<8x8x12xbf16>
    %13 = vector.shape_cast %12 : vector<8x8x12xbf16> to vector<64x12xbf16>
    %c0_16 = arith.constant 0 : index
    %c0_17 = arith.constant 0 : index
    %14 = vector.load %arg6[%c0_16, %c0_17] : memref<64x32xf32, #tpu.memory_space<vmem>>, vector<64x32xf32>
    %c1_18 = arith.constant 1 : index
    %c0_19 = arith.constant 0 : index
    %c0_20 = arith.constant 0 : index
    %15 = vector.load %arg2[%c1_18, %c0_19, %c0_20] : memref<4x12x32xbf16, #tpu.memory_space<vmem>>, vector<1x12x32xbf16>
    %16 = vector.shape_cast %15 : vector<1x12x32xbf16> to vector<12x32xbf16>
    %cst_21 = arith.constant dense<0.000000e+00> : vector<64x32xf32>
    %17 = tpu.matmul %13, %16, %cst_21 {dimension_numbers = #tpu.dot_dimension_numbers<[1], [0], [0], [1], [0, 0, 1, 1], [], []>} : vector<64x12xbf16>, vector<12x32xbf16>, vector<64x32xf32> -> vector<64x32xf32>
    %18 = arith.addf %14, %17 : vector<64x32xf32>
    %c0_22 = arith.constant 0 : index
    %c0_23 = arith.constant 0 : index
    %19 = vector.load %arg6[%c0_22, %c0_23] : memref<64x32xf32, #tpu.memory_space<vmem>>, vector<64x32xf32>
    tpu.vector_store %arg6[%c0_22, %c0_23], %18 {strides = array<i32>} : memref<64x32xf32, #tpu.memory_space<vmem>>, vector<64x32xf32>,
    %c0_24 = arith.constant 0 : index
    %c1_25 = arith.constant 1 : index
    %c0_26 = arith.constant 0 : index
    %c0_27 = arith.constant 0 : index
    %20 = vector.load %arg1[%c0_24, %c1_25, %c0_26, %c0_27] : memref<1x9x9x12xbf16, #tpu.memory_space<vmem>>, vector<1x8x8x12xbf16>
    %21 = vector.shape_cast %20 : vector<1x8x8x12xbf16> to vector<8x8x12xbf16>
    %22 = vector.shape_cast %21 : vector<8x8x12xbf16> to vector<64x12xbf16>
    %c0_28 = arith.constant 0 : index
    %c0_29 = arith.constant 0 : index
    %23 = vector.load %arg6[%c0_28, %c0_29] : memref<64x32xf32, #tpu.memory_space<vmem>>, vector<64x32xf32>
    %c2 = arith.constant 2 : index
    %c0_30 = arith.constant 0 : index
    %c0_31 = arith.constant 0 : index
    %24 = vector.load %arg2[%c2, %c0_30, %c0_31] : memref<4x12x32xbf16, #tpu.memory_space<vmem>>, vector<1x12x32xbf16>
    %25 = vector.shape_cast %24 : vector<1x12x32xbf16> to vector<12x32xbf16>
    %cst_32 = arith.constant dense<0.000000e+00> : vector<64x32xf32>
    %26 = tpu.matmul %22, %25, %cst_32 {dimension_numbers = #tpu.dot_dimension_numbers<[1], [0], [0], [1], [0, 0, 1, 1], [], []>} : vector<64x12xbf16>, vector<12x32xbf16>, vector<64x32xf32> -> vector<64x32xf32>
    %27 = arith.addf %23, %26 : vector<64x32xf32>
    %c0_33 = arith.constant 0 : index
    %c0_34 = arith.constant 0 : index
    %28 = vector.load %arg6[%c0_33, %c0_34] : memref<64x32xf32, #tpu.memory_space<vmem>>, vector<64x32xf32>
    tpu.vector_store %arg6[%c0_33, %c0_34], %27 {strides = array<i32>} : memref<64x32xf32, #tpu.memory_space<vmem>>, vector<64x32xf32>,
    %c0_35 = arith.constant 0 : index
    %c1_36 = arith.constant 1 : index
    %c1_37 = arith.constant 1 : index
    %c0_38 = arith.constant 0 : index
    %29 = vector.load %arg1[%c0_35, %c1_36, %c1_37, %c0_38] : memref<1x9x9x12xbf16, #tpu.memory_space<vmem>>, vector<1x8x8x12xbf16>
    %30 = vector.shape_cast %29 : vector<1x8x8x12xbf16> to vector<8x8x12xbf16>
    %31 = vector.shape_cast %30 : vector<8x8x12xbf16> to vector<64x12xbf16>
    %c0_39 = arith.constant 0 : index
    %c0_40 = arith.constant 0 : index
    %32 = vector.load %arg6[%c0_39, %c0_40] : memref<64x32xf32, #tpu.memory_space<vmem>>, vector<64x32xf32>
    %c3 = arith.constant 3 : index
    %c0_41 = arith.constant 0 : index
    %c0_42 = arith.constant 0 : index
    %33 = vector.load %arg2[%c3, %c0_41, %c0_42] : memref<4x12x32xbf16, #tpu.memory_space<vmem>>, vector<1x12x32xbf16>
    %34 = vector.shape_cast %33 : vector<1x12x32xbf16> to vector<12x32xbf16>
    %cst_43 = arith.constant dense<0.000000e+00> : vector<64x32xf32>
    %35 = tpu.matmul %31, %34, %cst_43 {dimension_numbers = #tpu.dot_dimension_numbers<[1], [0], [0], [1], [0, 0, 1, 1], [], []>} : vector<64x12xbf16>, vector<12x32xbf16>, vector<64x32xf32> -> vector<64x32xf32>
    %36 = arith.addf %32, %35 : vector<64x32xf32>
    %c0_44 = arith.constant 0 : index
    %c0_45 = arith.constant 0 : index
    %37 = vector.load %arg6[%c0_44, %c0_45] : memref<64x32xf32, #tpu.memory_space<vmem>>, vector<64x32xf32>
    tpu.vector_store %arg6[%c0_44, %c0_45], %36 {strides = array<i32>} : memref<64x32xf32, #tpu.memory_space<vmem>>, vector<64x32xf32>,
    %c0_46 = arith.constant 0 : index
    %c0_47 = arith.constant 0 : index
    %38 = vector.load %arg6[%c0_46, %c0_47] : memref<64x32xf32, #tpu.memory_space<vmem>>, vector<64x32xf32>
    %c0_48 = arith.constant 0 : index
    %c0_49 = arith.constant 0 : index
    %39 = vector.load %arg3[%c0_48, %c0_49] : memref<1x32xf32, #tpu.memory_space<vmem>>, vector<1x32xf32>
    %40 = vector.broadcast %39 : vector<1x32xf32> to vector<64x32xf32>
    %41 = arith.mulf %38, %40 : vector<64x32xf32>
    %c0_50 = arith.constant 0 : index
    %c0_51 = arith.constant 0 : index
    %42 = vector.load %arg4[%c0_50, %c0_51] : memref<1x32xf32, #tpu.memory_space<vmem>>, vector<1x32xf32>
    %43 = vector.broadcast %42 : vector<1x32xf32> to vector<64x32xf32>
    %44 = arith.addf %41, %43 : vector<64x32xf32>
    %cst_52 = arith.constant 0.000000e+00 : f32
    %45 = vector.broadcast %cst_52 : f32 to vector<64x32xf32>
    %46 = arith.maximumf %44, %45 : vector<64x32xf32>
    %47 = vector.shape_cast %46 : vector<64x32xf32> to vector<1x8x8x32xf32>
    %48 = arith.truncf %47 : vector<1x8x8x32xf32> to vector<1x8x8x32xbf16>
    %c0_53 = arith.constant 0 : index
    %c0_54 = arith.constant 0 : index
    %c0_55 = arith.constant 0 : index
    %c0_56 = arith.constant 0 : index
    %49 = vector.load %arg5[%c0_53, %c0_54, %c0_55, %c0_56] : memref<1x8x8x32xbf16, #tpu.memory_space<vmem>>, vector<1x8x8x32xbf16>
    tpu.vector_store %arg5[%c0_53, %c0_54, %c0_55, %c0_56], %48 {strides = array<i32>} : memref<1x8x8x32xbf16, #tpu.memory_space<vmem>>, vector<1x8x8x32xbf16>,
    return
  }
  func.func @transform_0(%arg0: i32) -> (i32, i32, i32, i32) {
    %c0_i32 = arith.constant 0 : i32
    %c0_i32_0 = arith.constant 0 : i32
    %c0_i32_1 = arith.constant 0 : i32
    %c0_i32_2 = arith.constant 0 : i32
    return %arg0, %c0_i32, %c0_i32_0, %c0_i32_1 : i32, i32, i32, i32
  }
  func.func @transform_1(%arg0: i32) -> (i32, i32, i32) {
    %c0_i32 = arith.constant 0 : i32
    %c0_i32_0 = arith.constant 0 : i32
    %c0_i32_1 = arith.constant 0 : i32
    %c0_i32_2 = arith.constant 0 : i32
    return %c0_i32, %c0_i32_0, %c0_i32_1 : i32, i32, i32
  }
  func.func @transform_2(%arg0: i32) -> (i32, i32) {
    %c0_i32 = arith.constant 0 : i32
    %c0_i32_0 = arith.constant 0 : i32
    %c0_i32_1 = arith.constant 0 : i32
    return %c0_i32, %c0_i32_0 : i32, i32
  }
  func.func @transform_3(%arg0: i32) -> (i32, i32) {
    %c0_i32 = arith.constant 0 : i32
    %c0_i32_0 = arith.constant 0 : i32
    %c0_i32_1 = arith.constant 0 : i32
    return %c0_i32, %c0_i32_0 : i32, i32
  }
  func.func @transform_4(%arg0: i32) -> (i32, i32, i32, i32) {
    %c0_i32 = arith.constant 0 : i32
    %c0_i32_0 = arith.constant 0 : i32
    %c0_i32_1 = arith.constant 0 : i32
    %c0_i32_2 = arith.constant 0 : i32
    return %arg0, %c0_i32, %c0_i32_0, %c0_i32_1 : i32, i32, i32, i32
  }
}

</mosaic_0001>

<bundles_post_ra>
// kernel: tpu_custom_call.1
= control target key start
LH: loop header
LB: loop body
LE: loop exit
PB: predicated region body
PF: predicated region fallthrough
CT: control target
= control target key end

     0   :  { %9 = vsyncpa [#allocation4], 0  ;;  %s1714_s0 = inlined_call_operand.vmem [shape: bf16[2,9,9,12], index: 0, kind: input, shape index: {}]   ;;  %s1715_s1 = inlined_call_operand.vmem [shape: bf16[4,12,32], index: 1, kind: input, shape index: {}]   ;;  %s1716_s2 = inlined_call_operand.vmem [shape: f32[1,32], index: 2, kind: input, shape index: {}]   ;;  %s1717_s3 = inlined_call_operand.vmem [shape: f32[1,32], index: 3, kind: input, shape index: {}]   ;;  %s1718_s4 = inlined_call_operand.hbm [shape: bf16[2,8,8,32], index: 4, kind: output, shape index: {}]  }
   0x1   :  { %11 = vsyncpa [#allocation4 + $0x1], 0  ;;  %s1426_s15 = smov 0   ;;  %s1428_s16 = smov 0  }
   0x2   :  { %s1430_s17 = smov 0   ;;  %s1432_s18 = smov 0  }
   0x3 LB: > { %s1447_s19 = sadd.s32 4294967295, %s1395_s18   ;;  %s1134_s20 = sadd.s32 4294967294, %s1395_s18   ;;  %s1395_s18 = sphi %s1432_s18, %s1726_s18   ;;  %s1391_s17 = sphi %s1430_s17, %s1725_s17   ;;  %s1387_s16 = sphi %s1428_s16, %s1724_s16   ;;  %s1383_s15 = sphi %s1426_s15, %s1723_s15  }
   0x4   : > { %s1451_s21 = sadd.s32 1, %s1395_s18   ;;  %s113_s22 = sadd.s32 1, %s1391_s17 }
   0x5   : > { %s110_s23 = ssub.s32 %s1395_s18, %s1451_s21  ;;  %p123_p0 = scmp.ne.s32.totalorder %s1391_s17, %s1387_s16 }
   0x6   : > { %p111_p1 = scmp.eq.s32.totalorder %s110_s23, 0  ;;  %p124_p2 = scmp.eq.s32.totalorder %s1447_s19, 1 }
   0x7   : > { %p129_p3 = scmp.ne.s32.totalorder %s1387_s16, %s1383_s15  ;;  %p130_p4 = scmp.eq.s32.totalorder %s1134_s20, 1 }
   0x8   : > { %s1462_s24 = scalar_select %p111_p1, %s1391_s17, %s113_s22  }
   0x9   : > { %p1464_p5 = por %p124_p2, %p123_p0  ;;  %p1468_p6 = por %p130_p4, %p129_p3 }
   0xa   : > { %p1137_p7 = scmp.ge.s32.totalorder %s1395_s18, 1  ;;  %p165_p8 = scmp.lt.s32.totalorder %s1395_s18, 3 }
   0xc   : > { %p166_p9 = pnand %p1137_p7, %p165_p8 }
   0xd   : > { %v1321_v0 = vld [vmem:[%s1715_s1] sm:$0x3f] (!%p166_p9)   ;;  %vm262_vm0 = vcmask (!%p166_p9), 1045504   ;;  %p191_p10 = scmp.lt.s32.totalorder (!%p166_p9), %s1447_s19, 1  ;;  %vm197_vm1 = vcmask (!%p166_p9), 261120   ;;  %v1397_v3 = vmov (!%p166_p9), 0.0  }
   0xe   : > { %169 = sbr.rel (%p166_p9) target bundleno = 323 (0x143), region = 36  ;;  %1274 = vmatprep.subr.msk.bf16.mxu0 (!%p166_p9), %vm262_vm0, %v1321_v0  ;;  %v264_v1 = vsel (!%p166_p9), %vm262_vm0, %v1321_v0, 0  ;;  %v1324_v2 = vld [vmem:[%s1715_s1 + $0x10] sm:$0x3f] (!%p166_p9)   ;;  %200 = vst.msk [vmem:[#allocation2 + $0x10] sm:$0xff] (!%p166_p9), %vm197_vm1, %v1397_v3  ;;  %198 = vst.msk [vmem:[#allocation2] sm:$0xff] (!%p166_p9), %vm197_vm1, %v1397_v3 }
   0xf   : > { %1235 = vmatpush3.bf16.msra.mxu0 (!%p166_p9), %v264_v1  ;;  %199 = vst.msk [vmem:[#allocation2 + $0x8] sm:$0xff] (!%p166_p9), %vm197_vm1, %v1397_v3  ;;  %201 = vst.msk [vmem:[#allocation2 + $0x18] sm:$0xff] (!%p166_p9), %vm197_vm1, %v1397_v3  ;;  %v1325_v4 = vld [vmem:[%s1715_s1 + $0x8] sm:$0x3f] (!%p166_p9)   ;;  %v1328_v6 = vld [vmem:[%s1715_s1 + $0x18] sm:$0x3f] (!%p166_p9)  }
  0x10   : > { %202 = vst.msk [vmem:[#allocation2 + $0x20] sm:$0xff] (!%p166_p9), %vm197_vm1, %v1397_v3  ;;  %203 = vst.msk [vmem:[#allocation2 + $0x28] sm:$0xff] (!%p166_p9), %vm197_vm1, %v1397_v3  ;;  %1276 = vmatprep.subr.msk.bf16.mxu0 (!%p166_p9), %vm262_vm0, %v1324_v2  ;;  %1275 = vmatprep.subr.msk.bf16.mxu1 (!%p166_p9), %vm262_vm0, %v1325_v4  ;;  %v519_v5 = vsel (!%p166_p9), %vm262_vm0, %v1325_v4, 0  ;;  %vm249_vm2 = vcmask (!%p166_p9), 97280   ;;  %v660_v7 = vsel (!%p166_p9), %vm262_vm0, %v1324_v2, 0  ;;  %v912_v53 = vsel (!%p166_p9), %vm262_vm0, %v1328_v6, 0 }
  0x11   : > { %204 = vst.msk [vmem:[#allocation2 + $0x30] sm:$0xff] (!%p166_p9), %vm197_vm1, %v1397_v3  ;;  %205 = vst.msk [vmem:[#allocation2 + $0x38] sm:$0xff] (!%p166_p9), %vm197_vm1, %v1397_v3  ;;  %1245 = vmatpush3.bf16.msra.mxu1 (!%p166_p9), %v519_v5  ;;  %vm363_vm3 = vsmask.f32 (!%p166_p9), 3328  ;;  %vm364_vm4 = vsmask.f32 (!%p166_p9), 7440 }
  0x12   : > { %1277 = vmatprep.subr.msk.bf16.mxu1 (!%p166_p9), %vm262_vm0, %v1328_v6  ;;  %vm1526_vm5 = vmor (!%p166_p9), %vm363_vm3, %vm364_vm4  ;;  %s188_s27 = sand.u32 (!%p166_p9), 1, %s1387_s16   ;;  %vm1049_vm6 = vcmask (!%p166_p9), 257024   ;;  %s1213_s30 = sshll.u32 (!%p166_p9), %s1447_s19, 9 }
  0x13   : > { %s1138_s28 = sshll.u32 (!%p166_p9), %s188_s27, 5  ;;  %s1398_s10 = smov (!%p166_p9), [#allocation3]  }
  0x14   : > { %s1644_s29 = scalar_lea.vmem (!%p166_p9), [#allocation3], %s1138_s28  ;;  %s1337_s11 = sshll.u32 (!%p166_p9), %s1398_s10, 4  ;;  %s1338_s11 = int_to_ptr.vmem [resolvable:$false] %s1337_s11 }
  0x15   : > { %s192_s5 = scalar_select %p191_p10, %s1447_s19, 1 }
  0x16   : > { %s1673_s19 = scalar_lea.sflag [#allocation4], %s188_s27  ;;  %s1339_s12 = scalar_lea.vmem %s1338_s11, 1024 }
  0x17   : > { %s1278_s8 = smul.u32 72, %s192_s5  ;;  %s1072_s5 = sshll.u32 %s1644_s29, 4  ;;  %s1663_s5 = int_to_ptr.vmem [resolvable:$true] %s1072_s5 }
  0x18   : > { %s1333_s9 = scalar_lea.vmem %s1663_s5, 512  ;;  %p1340_p0 = scmp.lt.s32.totalorder %s1663_s5, %s1338_s11 }
  0x19   : > { %s1504_s13 = scalar_lea.vmem %s1714_s0, %s1278_s8  ;;  %s1661_s8 = scalar_lea.hbm %s1718_s4, %s1213_s30 }
  0x1a   : > { %v1322_v8 = vld [vmem:[%s1504_s13] ss:$8 sps:$4 sm:$0xff]   ;;  %v1323_v9 = vld [vmem:[%s1504_s13 + $0x10] ss:$8 sps:$4 sm:$0xff]   ;;  %v348_v12 = vld [vmem:[%s1504_s13 + $0x4] sm:$0x1]  ;;  %p1334_p11 = scmp.ne.s32.totalorder %s1663_s5, %s1333_s9  ;;  %p1341_p1 = scmp.lt.s32.totalorder %s1339_s12, %s1333_s9 }
  0x1b   : > { %1236 = vmatprep.mubr.msk.bf16.mxu0 %vm249_vm2, %v1322_v8  ;;  %v1326_v10 = vld [vmem:[%s1504_s13 + $0x20] ss:$8 sps:$4 sm:$0xff]   ;;  %v1327_v14 = vld [vmem:[%s1504_s13 + $0x30] ss:$8 sps:$4 sm:$0xff]   ;;  %v350_v15 = vld [vmem:[%s1504_s13 + $0xc] sm:$0x1] }
  0x1c   : > { %1237 = vmatmul.mubr.msk.bf16.vlgmr.msra.gmra.mrb[0].mxu0 %vm249_vm2, %v1323_v9  ;;  %v347_v11 = vld [vmem:[%s1504_s13] sm:$0xf]  ;;  %v349_v13 = vld [vmem:[%s1504_s13 + $0x8] sm:$0xf]  ;;  %v376_v18 = vshll.u32 %v348_v12, 16  ;;  %v390_v21 = vshll.u32 %v350_v15, 16  ;;  %p1335_p12 = pnand %p1334_p11, %p1464_p5  ;;  %p1342_p2 = por %p1341_p1, %p1340_p0 }
  0x1d   : > { %1255 = vmatpush3.bf16.msra.mxu0 %v660_v7  ;;  %1240 = vmatprep.mubr.msk.bf16.mxu0 %vm249_vm2, %v1326_v10  ;;  %v367_v16 = vshrl.u32 %v347_v11, 16  ;;  %v370_v17 = vshll.u32 %v347_v11, 16  ;;  %v381_v19 = vshrl.u32 %v349_v13, 16  ;;  %v384_v20 = vshll.u32 %v349_v13, 16  ;;  %v351_v22 = vld [vmem:[%s1504_s13 + $0x10] sm:$0xf] }
  0x1e   : > { %v352_v23 = vld [vmem:[%s1504_s13 + $0x14] sm:$0x1]  ;;  %v378_v26 = vrot.slane %v376_v18, 5  ;;  %v353_v28 = vld [vmem:[%s1504_s13 + $0x18] sm:$0xf]  ;;  %v392_v30 = vrot.slane %v390_v21, 5  ;;  %p1336_p13 = pneg %p1335_p12 }
  0x1f   : > { %v369_v24 = vrot.slane %v367_v16, 4  ;;  %v372_v25 = vrot.slane %v370_v17, 5  ;;  %v383_v27 = vrot.slane %v381_v19, 4  ;;  %v386_v29 = vrot.slane %v384_v20, 5  ;;  %v354_v31 = vld [vmem:[%s1504_s13 + $0x1c] sm:$0x1] }
  0x20   : > { %v395_v32 = vshrl.u32 %v351_v22, 16  ;;  %v398_v33 = vshll.u32 %v351_v22, 16  ;;  %v404_v35 = vshll.u32 %v352_v23, 16  ;;  %v409_v36 = vshrl.u32 %v353_v28, 16  ;;  %v355_v38 = vld [vmem:[%s1504_s13 + $0x20] sm:$0xf]  ;;  %p1343_p3 = pnand %p1342_p2, %p1336_p13 }
  0x21   : > { %v373_v34 = vor.u32 %v372_v25, %v369_v24  ;;  %v412_v37 = vshll.u32 %v353_v28, 16  ;;  %v387_v40 = vor.u32 %v386_v29, %v383_v27  ;;  %v418_v43 = vshll.u32 %v354_v31, 16  ;;  %v356_v44 = vld [vmem:[%s1504_s13 + $0x24] sm:$0x1]  ;;  %v357_v49 = vld [vmem:[%s1504_s13 + $0x28] sm:$0xf] }
  0x22   : > { %v397_v41 = vrot.slane %v395_v32, 4  ;;  %v400_v42 = vrot.slane %v398_v33, 5  ;;  %v406_v46 = vrot.slane %v404_v35, 5  ;;  %v411_v47 = vrot.slane %v409_v36, 4  ;;  %v358_v54 = vld [vmem:[%s1504_s13 + $0x2c] sm:$0x1] }
  0x23   : > { %v374_v45 = vrot.slane %v373_v34, 4  ;;  %v414_v48 = vrot.slane %v412_v37, 5  ;;  %v388_v50 = vrot.slane %v387_v40, 4  ;;  %v420_v52 = vrot.slane %v418_v43, 5  ;;  %v1329_v63 = vld [vmem:[%s1504_s13 + $0x8] ss:$8 sps:$4 sm:$0xff]  }
  0x24   : > { %1241 = vmatmul.mubr.msk.bf16.gmra.mrb[4].mxu0 %vm249_vm2, %v1327_v14  ;;  %v401_v51 = vor.u32 %v400_v42, %v397_v41  ;;  %v423_v57 = vshrl.u32 %v355_v38, 16  ;;  %v426_v58 = vshll.u32 %v355_v38, 16  ;;  %v432_v61 = vshll.u32 %v356_v44, 16  ;;  %v359_v4 = vld [vmem:[%s1504_s13 + $0x30] sm:$0xf] }
  0x25   : > { %v379_v55 = vsel %vm1526_vm5, %v374_v45, %v378_v26  ;;  %v415_v56 = vor.u32 %v414_v48, %v411_v47  ;;  %v393_v59 = vsel %vm1526_vm5, %v388_v50, %v392_v30  ;;  %v437_v62 = vshrl.u32 %v357_v49, 16  ;;  %1256 = vmatprep.mubr.msk.bf16.mxu0 %vm249_vm2, %v1329_v63  ;;  %v360_v9 = vld [vmem:[%s1504_s13 + $0x34] sm:$0x1]  ;;  %v361_v13 = vld [vmem:[%s1504_s13 + $0x38] sm:$0xf] }
  0x26   : > { %v402_v60 = vrot.slane %v401_v51, 4  ;;  %v1151_v0 = vcombine.low %v379_v55, %v393_v59  ;;  %v425_v2 = vrot.slane %v423_v57, 4  ;;  %v428_v3 = vrot.slane %v426_v58, 5  ;;  %v362_v14 = vld [vmem:[%s1504_s13 + $0x3c] sm:$0x1] }
  0x27   : > { %v416_v1 = vrot.slane %v415_v56, 4  ;;  %v434_v6 = vrot.slane %v432_v61, 5  ;;  %v439_v7 = vrot.slane %v437_v62, 4  ;;  %v440_v8 = vshll.u32 %v357_v49, 16  ;;  %v1330_v28 = vld [vmem:[%s1504_s13 + $0x18] ss:$8 sps:$4 sm:$0xff]  }
  0x28   : > { %v407_v5 = vsel %vm1526_vm5, %v402_v60, %v406_v46  ;;  %1246 = vmatprep.mubr.msk.bf16.mxu1 %vm249_vm2, %v1151_v0  ;;  %v429_v11 = vor.u32 %v428_v3, %v425_v2  ;;  %v446_v12 = vshll.u32 %v358_v54, 16  ;;  %v451_v15 = vshrl.u32 %v359_v4, 16  ;;  %v1331_v35 = vld [vmem:[%s1504_s13 + $0x28] ss:$8 sps:$4 sm:$0xff]   ;;  %v1332_v41 = vld [vmem:[%s1504_s13 + $0x38] ss:$8 sps:$4 sm:$0xff]  }
  0x29   : > { %v421_v10 = vsel %vm1526_vm5, %v416_v1, %v420_v52  ;;  %v442_v17 = vrot.slane %v440_v8, 5  ;;  %v454_v18 = vshll.u32 %v359_v4, 16  ;;  %v460_v19 = vshll.u32 %v360_v9, 16  ;;  %v1179_v42 = vld [vmem:[%s1504_s13 + $0x8] sm:$0xf] }
  0x2a   : > { %v1152_v16 = vcombine.low %v407_v5, %v421_v10  ;;  %v430_v20 = vrot.slane %v429_v11, 4  ;;  %v448_v21 = vrot.slane %v446_v12, 5  ;;  %v453_v22 = vrot.slane %v451_v15, 4  ;;  %v1180_v43 = vld [vmem:[%s1504_s13 + $0xc] sm:$0x1] }
  0x2b   : > { %v465_v23 = vshrl.u32 %v361_v13, 16  ;;  %v443_v24 = vor.u32 %v442_v17, %v439_v7  ;;  %v456_v25 = vrot.slane %v454_v18, 5  ;;  %v462_v26 = vrot.slane %v460_v19, 5  ;;  %v1181_v45 = vld [vmem:[%s1504_s13 + $0x10] sm:$0xf] }
  0x2c   : > { %1247 = vmatmul.mubr.msk.bf16.vlgmr.msra.gmra.mrb[0].mxu1 %vm249_vm2, %v1152_v16  ;;  %v468_v27 = vshll.u32 %v361_v13, 16  ;;  %v474_v30 = vshll.u32 %v362_v14, 16  ;;  %v435_v31 = vsel %vm1526_vm5, %v430_v20, %v434_v6  ;;  %1257 = vmatmul.mubr.msk.bf16.vlgmr.msra.gmra.mrb[8].mxu0 %vm249_vm2, %v1330_v28  ;;  %v1182_v46 = vld [vmem:[%s1504_s13 + $0x14] sm:$0x1]  ;;  %v760_v47 = vshrl.u32 %v1179_v42, 16 }
  0x2d   : > { %1265 = vmatpush3.bf16.msra.mxu1 %v912_v53  ;;  %v467_v29 = vrot.slane %v465_v23, 4  ;;  %v444_v32 = vrot.slane %v443_v24, 4  ;;  %v457_v33 = vor.u32 %v456_v25, %v453_v22  ;;  %1260 = vmatprep.mubr.msk.bf16.mxu0 %vm249_vm2, %v1331_v35  ;;  %v763_v48 = vshll.u32 %v1179_v42, 16  ;;  %v1183_v53 = vld [vmem:[%s1504_s13 + $0x18] sm:$0xf] }
  0x2e   : > { %v470_v34 = vrot.slane %v468_v27, 5  ;;  %v476_v40 = vrot.slane %v474_v30, 5  ;;  %v769_v51 = vshll.u32 %v1180_v43, 16  ;;  %v774_v52 = vshrl.u32 %v1181_v45, 16  ;;  %v1184_v58 = vld [vmem:[%s1504_s13 + $0x1c] sm:$0x1] }
  0x2f   : > { %v449_v36 = vsel %vm1526_vm5, %v444_v32, %v448_v21  ;;  %v458_v37 = vrot.slane %v457_v33, 4  ;;  %v762_v54 = vrot.slane %v760_v47, 4  ;;  %v765_v55 = vrot.slane %v763_v48, 5  ;;  %v1185_v62 = vld [vmem:[%s1504_s13 + $0x20] sm:$0xf] }
  0x30   : > { %v471_v38 = vor.u32 %v470_v34, %v467_v29  ;;  %v1153_v44 = vcombine.low %v435_v31, %v449_v36  ;;  %v777_v56 = vshll.u32 %v1181_v45, 16  ;;  %v783_v57 = vshll.u32 %v1182_v46, 16  ;;  %v1186_v63 = vld [vmem:[%s1504_s13 + $0x24] sm:$0x1]  ;;  %v1187_v8 = vld [vmem:[%s1504_s13 + $0x28] sm:$0xf] }
  0x31   : > { %v463_v49 = vsel %vm1526_vm5, %v458_v37, %v462_v26  ;;  %v771_v60 = vrot.slane %v769_v51, 5  ;;  %v776_v61 = vrot.slane %v774_v52, 4  ;;  %v766_v1 = vor.u32 %v765_v55, %v762_v54  ;;  %v1188_v13 = vld [vmem:[%s1504_s13 + $0x2c] sm:$0x1]  ;;  %v1189_v18 = vld [vmem:[%s1504_s13 + $0x30] sm:$0xf] }
  0x32   : > { %v472_v50 = vrot.slane %v471_v38, 4  ;;  %1250 = vmatprep.mubr.msk.bf16.mxu1 %vm249_vm2, %v1153_v44  ;;  %v779_v2 = vrot.slane %v777_v56, 5  ;;  %v785_v3 = vrot.slane %v783_v57, 5  ;;  %v788_v4 = vshrl.u32 %v1183_v53, 16  ;;  %v1190_v29 = vld [vmem:[%s1504_s13 + $0x34] sm:$0x1] }
  0x33   : > { %v791_v5 = vshll.u32 %v1183_v53, 16  ;;  %v797_v6 = vshll.u32 %v1184_v58, 16  ;;  %v802_v7 = vshrl.u32 %v1185_v62, 16  ;;  %v767_v9 = vrot.slane %v766_v1, 4  ;;  %v1191_v32 = vld [vmem:[%s1504_s13 + $0x38] sm:$0xf] }
  0x34   : > { %v477_v59 = vsel %vm1526_vm5, %v472_v50, %v476_v40  ;;  %1261 = vmatmul.mubr.msk.bf16.gmra.mrb[12].mxu0 %vm249_vm2, %v1332_v41  ;;  %v780_v10 = vor.u32 %v779_v2, %v776_v61  ;;  %v805_v11 = vshll.u32 %v1185_v62, 16  ;;  %v811_v12 = vshll.u32 %v1186_v63, 16  ;;  %v1192_v37 = vld [vmem:[%s1504_s13 + $0x3c] sm:$0x1]  ;;  %v1193_v46 = vld [vmem:[%s1504_s13 + $0x40] sm:$0xf] }
  0x35   : > { %v1154_v0 = vcombine.low %v463_v49, %v477_v59  ;;  %v790_v14 = vrot.slane %v788_v4, 4  ;;  %v793_v15 = vrot.slane %v791_v5, 5  ;;  %v799_v16 = vrot.slane %v797_v6, 5  ;;  %v1194_v50 = vld [vmem:[%s1504_s13 + $0x44] sm:$0x1] }
  0x36   : > { %v804_v17 = vrot.slane %v802_v7, 4  ;;  %v772_v19 = vsel %vm1526_vm5, %v767_v9, %v771_v60  ;;  %v781_v20 = vrot.slane %v780_v10, 4  ;;  %v807_v21 = vrot.slane %v805_v11, 5 }
  0x37   : > { %1251 = vmatmul.mubr.msk.bf16.gmra.mrb[4].mxu1 %vm249_vm2, %v1154_v0  ;;  %v813_v22 = vrot.slane %v811_v12, 5  ;;  %v794_v23 = vor.u32 %v793_v15, %v790_v14  ;;  %v816_v24 = vshrl.u32 %v1187_v8, 16  ;;  %v819_v25 = vshll.u32 %v1187_v8, 16  ;;  %v216_v12 = vld [vmem:[#allocation2 + $0x10] sm:$0xff]  ;;  %v217_v15 = vld [vmem:[#allocation2 + $0x18] sm:$0xff] }
  0x38   : > { %v825_v26 = vshll.u32 %v1188_v13, 16  ;;  %v786_v27 = vsel %vm1526_vm5, %v781_v20, %v785_v3  ;;  %v808_v28 = vor.u32 %v807_v21, %v804_v17  ;;  %v830_v30 = vshrl.u32 %v1189_v18, 16  ;;  %v214_v13 = vld [vmem:[#allocation2] sm:$0xff] }
  0x39   : > { %v833_v31 = vshll.u32 %v1189_v18, 16  ;;  %v1197_v33 = vcombine.low %v772_v19, %v786_v27  ;;  %v795_v34 = vrot.slane %v794_v23, 4  ;;  %v818_v35 = vrot.slane %v816_v24, 4  ;;  %v215_v18 = vld [vmem:[#allocation2 + $0x8] sm:$0xff]  ;;  %v220_v23 = vld [vmem:[#allocation2 + $0x30] sm:$0xff]  ;;  %v218_v24 = vld [vmem:[#allocation2 + $0x20] sm:$0xff] }
  0x3a   : > { %v821_v36 = vrot.slane %v819_v25, 5  ;;  %v809_v38 = vrot.slane %v808_v28, 4  ;;  %v827_v40 = vrot.slane %v825_v26, 5  ;;  %v832_v41 = vrot.slane %v830_v30, 4  ;;  %v221_v26 = vld [vmem:[#allocation2 + $0x38] sm:$0xff] }
  0x3b   : > { %v835_v42 = vrot.slane %v833_v31, 5  ;;  %1266 = vmatprep.mubr.msk.bf16.mxu1 %vm249_vm2, %v1197_v33  ;;  %v800_v43 = vsel %vm1526_vm5, %v795_v34, %v799_v16  ;;  %v839_v45 = vshll.u32 %v1190_v29, 16  ;;  %v844_v47 = vshrl.u32 %v1191_v32, 16  ;;  %v219_v29 = vld [vmem:[#allocation2 + $0x28] sm:$0xff] }
  0x3c   : > { %v822_v44 = vor.u32 %v821_v36, %v818_v35  ;;  %v814_v48 = vsel %vm1526_vm5, %v809_v38, %v813_v22  ;;  %v847_v51 = vshll.u32 %v1191_v32, 16  ;;  %v853_v52 = vshll.u32 %v1192_v37, 16 }
  0x3d   : > { %v836_v49 = vor.u32 %v835_v42, %v832_v41  ;;  %v1198_v53 = vcombine.low %v800_v43, %v814_v48  ;;  %v841_v55 = vrot.slane %v839_v45, 5  ;;  %v846_v56 = vrot.slane %v844_v47, 4 }
  0x3e   : > { %v823_v54 = vrot.slane %v822_v44, 4  ;;  %v849_v58 = vrot.slane %v847_v51, 5  ;;  %v858_v59 = vshrl.u32 %v1193_v46, 16  ;;  %v861_v61 = vshll.u32 %v1193_v46, 16 }
  0x3f   : > { %v837_v57 = vrot.slane %v836_v49, 4  ;;  %1267 = vmatmul.mubr.msk.bf16.vlgmr.msra.gmra.mrb[8].mxu1 %vm249_vm2, %v1198_v53  ;;  %v867_v62 = vshll.u32 %v1194_v50, 16  ;;  %v855_v3 = vrot.slane %v853_v52, 5 }
  0x40   : > { %v828_v60 = vsel %vm1526_vm5, %v823_v54, %v827_v40  ;;  %v850_v0 = vor.u32 %v849_v58, %v846_v56  ;;  %v860_v1 = vrot.slane %v858_v59, 4  ;;  %v863_v4 = vrot.slane %v861_v61, 5 }
  0x41   : > { %v842_v63 = vsel %vm1526_vm5, %v837_v57, %v841_v55  ;;  %v869_v7 = vrot.slane %v867_v62, 5 }
  0x42   : > { %v1199_v2 = vcombine.low %v828_v60, %v842_v63  ;;  %v851_v5 = vrot.slane %v850_v0, 4  ;;  %v864_v6 = vor.u32 %v863_v4, %v860_v1 }
  0x44   : > { %1270 = vmatprep.mubr.msk.bf16.mxu1 %vm249_vm2, %v1199_v2  ;;  %v856_v8 = vsel %vm1526_vm5, %v851_v5, %v855_v3  ;;  %v865_v9 = vrot.slane %v864_v6, 4 }
  0x46   : > { %v870_v10 = vsel %vm1526_vm5, %v865_v9, %v869_v7 }
  0x47   : > { %v1200_v11 = vcombine.low %v856_v8, %v870_v10 }
  0x49   : > { %1271 = vmatmul.mubr.msk.bf16.gmra.mrb[12].mxu1 %vm249_vm2, %v1200_v11 }
  0xef   : > { %v1238_v14 = vpop.f32.mrb[0].mxu0 }
  0xf0   : > { %v333_v16 = vadd.f32 %v1238_v14, %v216_v12  ;;  %v300_v17 = vpop.f32.mrb[1].mxu0 }
  0xf1   : > { %v331_v19 = vadd.f32 %v300_v17, %v214_v13  ;;  %v1239_v20 = vpop.f32.mrb[2].mxu0 }
  0xf2   : > { %341 = vst.msk [vmem:[#allocation2 + $0x10] sm:$0xff] %vm197_vm1, %v333_v16  ;;  %v334_v21 = vadd.f32 %v1239_v20, %v217_v15  ;;  %v303_v22 = vpop.f32.mrb[3].mxu0 }
  0xf3   : > { %339 = vst.msk [vmem:[#allocation2] sm:$0xff] %vm197_vm1, %v331_v19  ;;  %v332_v39 = vadd.f32 %v303_v22, %v215_v18 }
  0xf4   : > { %342 = vst.msk [vmem:[#allocation2 + $0x18] sm:$0xff] %vm197_vm1, %v334_v21 }
  0xf5   : > { %340 = vst.msk [vmem:[#allocation2 + $0x8] sm:$0xff] %vm197_vm1, %v332_v39 }
  0xf7   : > { %v1242_v25 = vpop.f32.mrb[4].mxu0 }
  0xf8   : > { %v337_v27 = vadd.f32 %v1242_v25, %v220_v23  ;;  %v316_v28 = vpop.f32.mrb[5].mxu0 }
  0xf9   : > { %v335_v30 = vadd.f32 %v316_v28, %v218_v24  ;;  %v1243_v31 = vpop.f32.mrb[6].mxu0  ;;  %v480_v35 = vld [vmem:[#allocation2 + $0x10] sm:$0xff] }
  0xfa   : > { %345 = vst.msk [vmem:[#allocation2 + $0x30] sm:$0xff] %vm197_vm1, %v337_v27  ;;  %v338_v32 = vadd.f32 %v1243_v31, %v221_v26  ;;  %v319_v33 = vpop.f32.mrb[7].mxu0  ;;  %v478_v36 = vld [vmem:[#allocation2] sm:$0xff] }
  0xfb   : > { %343 = vst.msk [vmem:[#allocation2 + $0x20] sm:$0xff] %vm197_vm1, %v335_v30  ;;  %v336_v34 = vadd.f32 %v319_v33, %v219_v29  ;;  %v481_v38 = vld [vmem:[#allocation2 + $0x18] sm:$0xff]  ;;  %v1206_v31 = vld [vmem:[%s1716_s2] ss:$0 sm:$0xff] }
  0xfc   : > { %346 = vst.msk [vmem:[#allocation2 + $0x38] sm:$0xff] %vm197_vm1, %v338_v32  ;;  %v479_v42 = vld [vmem:[#allocation2 + $0x8] sm:$0xff] }
  0xfd   : > { %344 = vst.msk [vmem:[#allocation2 + $0x28] sm:$0xff] %vm197_vm1, %v336_v34  ;;  %v1207_v34 = vld [vmem:[%s1717_s3] ss:$0 sm:$0xff] }
  0xff   : > { %v1248_v37 = vpop.f32.mrb[0].mxu1  ;;  %v1258_v45 = vpop.f32.mrb[8].mxu0 }
 0x100   : > { %v588_v40 = vadd.f32 %v1248_v37, %v480_v35  ;;  %v555_v41 = vpop.f32.mrb[1].mxu1  ;;  %v696_v48 = vpop.f32.mrb[9].mxu0 }
 0x101   : > { %v586_v43 = vadd.f32 %v555_v41, %v478_v36  ;;  %v1249_v44 = vpop.f32.mrb[2].mxu1  ;;  %v1259_v50 = vpop.f32.mrb[10].mxu0  ;;  %v484_v52 = vld [vmem:[#allocation2 + $0x30] sm:$0xff] }
 0x102   : > { %596 = vst.msk [vmem:[#allocation2 + $0x10] sm:$0xff] %vm197_vm1, %v588_v40  ;;  %v589_v46 = vadd.f32 %v1249_v44, %v481_v38  ;;  %v558_v47 = vpop.f32.mrb[3].mxu1  ;;  %v699_v51 = vpop.f32.mrb[11].mxu0  ;;  %v482_v54 = vld [vmem:[#allocation2 + $0x20] sm:$0xff] }
 0x103   : > { %594 = vst.msk [vmem:[#allocation2] sm:$0xff] %vm197_vm1, %v586_v43  ;;  %v587_v49 = vadd.f32 %v558_v47, %v479_v42  ;;  %v485_v59 = vld [vmem:[#allocation2 + $0x38] sm:$0xff] }
 0x104   : > { %597 = vst.msk [vmem:[#allocation2 + $0x18] sm:$0xff] %vm197_vm1, %v589_v46  ;;  %v483_v1 = vld [vmem:[#allocation2 + $0x28] sm:$0xff] }
 0x105   : > { %595 = vst.msk [vmem:[#allocation2 + $0x8] sm:$0xff] %vm197_vm1, %v587_v49 }
 0x107   : > { %v1262_v55 = vpop.f32.mrb[12].mxu0 }
 0x108   : > { %v712_v60 = vpop.f32.mrb[13].mxu0 }
 0x109   : > { %v613_v53 = vld [vmem:[#allocation2 + $0x10] sm:$0xff]  ;;  %v1263_v2 = vpop.f32.mrb[14].mxu0 }
 0x10a   : > { %v1252_v56 = vpop.f32.mrb[4].mxu1  ;;  %v729_v57 = vadd.f32 %v1258_v45, %v613_v53  ;;  %v611_v58 = vld [vmem:[#allocation2] sm:$0xff]  ;;  %v715_v7 = vpop.f32.mrb[15].mxu0 }
 0x10b   : > { %v592_v61 = vadd.f32 %v1252_v56, %v484_v52  ;;  %v571_v62 = vpop.f32.mrb[5].mxu1  ;;  %v727_v63 = vadd.f32 %v696_v48, %v611_v58  ;;  %v614_v0 = vld [vmem:[#allocation2 + $0x18] sm:$0xff] }
 0x10c   : > { %737 = vst.msk [vmem:[#allocation2 + $0x10] sm:$0xff] %vm197_vm1, %v729_v57  ;;  %v590_v3 = vadd.f32 %v571_v62, %v482_v54  ;;  %v1253_v4 = vpop.f32.mrb[6].mxu1  ;;  %v730_v5 = vadd.f32 %v1259_v50, %v614_v0  ;;  %v612_v6 = vld [vmem:[#allocation2 + $0x8] sm:$0xff] }
 0x10d   : > { %600 = vst.msk [vmem:[#allocation2 + $0x30] sm:$0xff] %vm197_vm1, %v592_v61  ;;  %735 = vst.msk [vmem:[#allocation2] sm:$0xff] %vm197_vm1, %v727_v63  ;;  %v593_v8 = vadd.f32 %v1253_v4, %v485_v59  ;;  %v574_v9 = vpop.f32.mrb[7].mxu1  ;;  %v728_v10 = vadd.f32 %v699_v51, %v612_v6 }
 0x10e   : > { %598 = vst.msk [vmem:[#allocation2 + $0x20] sm:$0xff] %vm197_vm1, %v590_v3  ;;  %738 = vst.msk [vmem:[#allocation2 + $0x18] sm:$0xff] %vm197_vm1, %v730_v5  ;;  %v591_v11 = vadd.f32 %v574_v9, %v483_v1 }
 0x10f   : > { %601 = vst.msk [vmem:[#allocation2 + $0x38] sm:$0xff] %vm197_vm1, %v593_v8  ;;  %736 = vst.msk [vmem:[#allocation2 + $0x8] sm:$0xff] %vm197_vm1, %v728_v10 }
 0x110   : > { %599 = vst.msk [vmem:[#allocation2 + $0x28] sm:$0xff] %vm197_vm1, %v591_v11 }
 0x112   : > { %v1268_v17 = vpop.f32.mrb[8].mxu1 }
 0x113   : > { %v873_v12 = vld [vmem:[#allocation2 + $0x10] sm:$0xff]  ;;  %v948_v22 = vpop.f32.mrb[9].mxu1 }
 0x114   : > { %v617_v13 = vld [vmem:[#allocation2 + $0x30] sm:$0xff]  ;;  %v871_v14 = vld [vmem:[#allocation2] sm:$0xff]  ;;  %v981_v21 = vadd.f32 %v1268_v17, %v873_v12  ;;  %v1269_v26 = vpop.f32.mrb[10].mxu1 }
 0x115   : > { %v733_v15 = vadd.f32 %v1262_v55, %v617_v13  ;;  %v615_v16 = vld [vmem:[#allocation2 + $0x20] sm:$0xff]  ;;  %v874_v18 = vld [vmem:[#allocation2 + $0x18] sm:$0xff]  ;;  %v979_v25 = vadd.f32 %v948_v22, %v871_v14  ;;  %v951_v29 = vpop.f32.mrb[11].mxu1 }
 0x116   : > { %v731_v19 = vadd.f32 %v712_v60, %v615_v16  ;;  %v618_v20 = vld [vmem:[#allocation2 + $0x38] sm:$0xff]  ;;  %v872_v39 = vld [vmem:[#allocation2 + $0x8] sm:$0xff]  ;;  %989 = vst.msk [vmem:[#allocation2 + $0x10] sm:$0xff] %vm197_vm1, %v981_v21  ;;  %v982_v28 = vadd.f32 %v1269_v26, %v874_v18 }
 0x117   : > { %741 = vst.msk [vmem:[#allocation2 + $0x30] sm:$0xff] %vm197_vm1, %v733_v15  ;;  %v734_v23 = vadd.f32 %v1263_v2, %v618_v20  ;;  %v616_v24 = vld [vmem:[#allocation2 + $0x28] sm:$0xff]  ;;  %987 = vst.msk [vmem:[#allocation2] sm:$0xff] %vm197_vm1, %v979_v25  ;;  %v980_v30 = vadd.f32 %v951_v29, %v872_v39 }
 0x118   : > { %739 = vst.msk [vmem:[#allocation2 + $0x20] sm:$0xff] %vm197_vm1, %v731_v19  ;;  %v732_v27 = vadd.f32 %v715_v7, %v616_v24  ;;  %990 = vst.msk [vmem:[#allocation2 + $0x18] sm:$0xff] %vm197_vm1, %v982_v28 }
 0x119   : > { %742 = vst.msk [vmem:[#allocation2 + $0x38] sm:$0xff] %vm197_vm1, %v734_v23  ;;  %988 = vst.msk [vmem:[#allocation2 + $0x8] sm:$0xff] %vm197_vm1, %v980_v30 }
 0x11a   : > { %740 = vst.msk [vmem:[#allocation2 + $0x28] sm:$0xff] %vm197_vm1, %v732_v27 }
 0x11c   : > { %v1272_v38 = vpop.f32.mrb[12].mxu1 }
 0x11d   : > { %v997_v33 = vld [vmem:[#allocation2 + $0x10] sm:$0xff]  ;;  %v964_v44 = vpop.f32.mrb[13].mxu1 }
 0x11e   : > { %v877_v32 = vld [vmem:[#allocation2 + $0x30] sm:$0xff]  ;;  %v1012_v36 = vmul.f32 %v1206_v31, %v997_v33  ;;  %v995_v37 = vld [vmem:[#allocation2] sm:$0xff]  ;;  %v1273_v50 = vpop.f32.mrb[14].mxu1 }
 0x11f   : > { %v875_v35 = vld [vmem:[#allocation2 + $0x20] sm:$0xff]  ;;  %v1010_v41 = vmul.f32 %v1206_v31, %v995_v37  ;;  %v998_v42 = vld [vmem:[#allocation2 + $0x18] sm:$0xff]  ;;  %v985_v43 = vadd.f32 %v1272_v38, %v877_v32  ;;  %v967_v54 = vpop.f32.mrb[15].mxu1 }
 0x120   : > { %v878_v40 = vld [vmem:[#allocation2 + $0x38] sm:$0xff]  ;;  %v1027_v46 = vadd.f32 %v1207_v34, %v1012_v36  ;;  %v1013_v47 = vmul.f32 %v1206_v31, %v998_v42  ;;  %v996_v48 = vld [vmem:[#allocation2 + $0x8] sm:$0xff]  ;;  %v983_v49 = vadd.f32 %v964_v44, %v875_v35 }
 0x121   : > { %v876_v45 = vld [vmem:[#allocation2 + $0x28] sm:$0xff]  ;;  %v1025_v51 = vadd.f32 %v1207_v34, %v1010_v41  ;;  %v1011_v52 = vmul.f32 %v1206_v31, %v996_v48  ;;  %993 = vst.msk [vmem:[#allocation2 + $0x30] sm:$0xff] %vm197_vm1, %v985_v43  ;;  %v986_v53 = vadd.f32 %v1273_v50, %v878_v40 }
 0x122   : > { %v1035_v55 = vmax.f32 %v1027_v46, 0.0  ;;  %v1028_v56 = vadd.f32 %v1207_v34, %v1013_v47  ;;  %991 = vst.msk [vmem:[#allocation2 + $0x20] sm:$0xff] %vm197_vm1, %v983_v49  ;;  %v984_v57 = vadd.f32 %v967_v54, %v876_v45 }
 0x123   : > { %v1033_v58 = vmax.f32 %v1025_v51, 0.0  ;;  %v1026_v59 = vadd.f32 %v1207_v34, %v1011_v52  ;;  %994 = vst.msk [vmem:[#allocation2 + $0x38] sm:$0xff] %vm197_vm1, %v986_v53 }
 0x124   : > { %v1043_v60 = vpack.c.bf16 %v1035_v55, %v1035_v55  ;;  %v1036_v61 = vmax.f32 %v1028_v56, 0.0  ;;  %992 = vst.msk [vmem:[#allocation2 + $0x28] sm:$0xff] %vm197_vm1, %v984_v57 }
 0x125   : > { %v1041_v62 = vpack.c.bf16 %v1033_v58, %v1033_v58  ;;  %v1034_v63 = vmax.f32 %v1026_v59, 0.0 }
 0x126   : > { %v1044_v0 = vpack.c.bf16 %v1036_v61, %v1036_v61  ;;  %1052 = vst.msk [vmem:[%s1644_s29 + $0x8] sm:$0xf] %vm1049_vm6, %v1043_v60 }
 0x127   : > { %v1042_v1 = vpack.c.bf16 %v1034_v63, %v1034_v63  ;;  %1050 = vst.msk [vmem:[%s1644_s29] sm:$0xf] %vm1049_vm6, %v1041_v62 }
 0x128   : > { %v1001_v2 = vld [vmem:[#allocation2 + $0x30] sm:$0xff]  ;;  %1053 = vst.msk [vmem:[%s1644_s29 + $0xc] sm:$0xf] %vm1049_vm6, %v1044_v0 }
 0x129   : > { %v1016_v3 = vmul.f32 %v1206_v31, %v1001_v2  ;;  %v999_v4 = vld [vmem:[#allocation2 + $0x20] sm:$0xff]  ;;  %1051 = vst.msk [vmem:[%s1644_s29 + $0x4] sm:$0xf] %vm1049_vm6, %v1042_v1 }
 0x12a   : > { %v1014_v5 = vmul.f32 %v1206_v31, %v999_v4  ;;  %v1002_v6 = vld [vmem:[#allocation2 + $0x38] sm:$0xff] }
 0x12b   : > { %v1031_v7 = vadd.f32 %v1207_v34, %v1016_v3  ;;  %v1017_v8 = vmul.f32 %v1206_v31, %v1002_v6  ;;  %v1000_v9 = vld [vmem:[#allocation2 + $0x28] sm:$0xff] }
 0x12c   : > { %v1029_v10 = vadd.f32 %v1207_v34, %v1014_v5  ;;  %v1015_v11 = vmul.f32 %v1206_v31, %v1000_v9 }
 0x12d   : > { %v1039_v12 = vmax.f32 %v1031_v7, 0.0  ;;  %v1032_v13 = vadd.f32 %v1207_v34, %v1017_v8 }
 0x12e   : > { %v1037_v14 = vmax.f32 %v1029_v10, 0.0  ;;  %v1030_v15 = vadd.f32 %v1207_v34, %v1015_v11 }
 0x12f   : > { %v1047_v16 = vpack.c.bf16 %v1039_v12, %v1039_v12  ;;  %v1040_v17 = vmax.f32 %v1032_v13, 0.0 }
 0x130   : > { %v1045_v18 = vpack.c.bf16 %v1037_v14, %v1037_v14  ;;  %v1038_v19 = vmax.f32 %v1030_v15, 0.0 }
 0x131   : > { %v1048_v20 = vpack.c.bf16 %v1040_v17, %v1040_v17  ;;  %1056 = vst.msk [vmem:[%s1644_s29 + $0x18] sm:$0xf] %vm1049_vm6, %v1047_v16 }
 0x132   : > { %v1046_v21 = vpack.c.bf16 %v1038_v19, %v1038_v19  ;;  %1054 = vst.msk [vmem:[%s1644_s29 + $0x10] sm:$0xf] %vm1049_vm6, %v1045_v18 }
 0x133   : > { %1057 = vst.msk [vmem:[%s1644_s29 + $0x1c] sm:$0xf] %vm1049_vm6, %v1048_v20 }
 0x134   : > { %1055 = vst.msk [vmem:[%s1644_s29 + $0x14] sm:$0xf] %vm1049_vm6, %v1046_v21 }
 0x135   : > { %1346 = shalt.err (!%p1343_p3)
}
 0x136   : > { %s1347_s13 = scalar_lea.hbm %s1661_s8, 512  ;;  %s1351_s22 = scalar_lea.hbm %s1718_s4, 1024 }
 0x137   : > { %p1348_p4 = scmp.ne.s32.totalorder %s1661_s8, %s1347_s13  ;;  %p1352_p9 = scmp.lt.u32.totalorder %s1661_s8, %s1718_s4 }
 0x138   : > { %p1353_p10 = scmp.lt.u32.totalorder %s1351_s22, %s1347_s13  ;;  %p1355_p12 = scmp.lt.u32.totalorder %s1347_s13, %s1661_s8 }
 0x139   : > { %p1349_p7 = pnand %p1348_p4, %p1464_p5 }
 0x13a   : > { %p1354_p11 = por %p1353_p10, %p1352_p9 }
 0x13b   : > { %p1350_p8 = pneg %p1349_p7 }
 0x13c   : > { %p1356_p13 = por %p1355_p12, %p1354_p11 }
 0x13e   : > { %p1357_p0 = pnand %p1356_p13, %p1350_p8 }
 0x140   : > { %1360 = shalt.err (!%p1357_p0)
}
 0x141   : > { %s1399_s28 = smov 64   ;;  %s1400_s29 = smov 4  }
 0x142   : > { %1279 = dma.vmem_to_hbm [thread:$0]  (%p1464_p5), %s1663_s5, 512, %s1661_s8, %s1673_s19, %s1399_s28, %s1399_s28, %s1400_s29  }
 0x143 PF: > { %p1285_p1 = scmp.ge.s32.totalorder %s1395_s18, 2  ;;  %s1087_s30 = sand.u32 1, %s1383_s15  }
 0x144   : > { %s1088_s6 = scalar_lea.sflag [#allocation4], %s1087_s30 }
 0x145   : > { %p1282_p2 = pnand %p1285_p1, %p1468_p6 }
 0x147   : > { %1378 = dma.done.wait (!%p1282_p2), %s1088_s6, 512  }
 0x148   : > { %1380 = vsyncadd (!%p1282_p2), %s1088_s6, 4294966784  ;;  %p14_p3 = scmp.ge.s32.totalorder %s1451_s21, 4   ;;  %s1723_s15 = smov %s1387_s16 }
 0x149   : > { %s1724_s16 = smov %s1391_s17  ;;  %s1725_s17 = smov %s1462_s24 }
 0x14a   : > { %s1726_s18 = smov %s1451_s21  ;;  %16 = sbr.rel (!%p14_p3) target bundleno = 3 (0x3), region = 75 }
 0x151   :  { %1093 = vsyncpa [#allocation4], 1 }
 0x152   :  { %1095 = vsyncpa [#allocation4 + $0x1], 1 }

</bundles_post_ra>
